<compile_context>
chip_gen: v6e
topology: v6e:2x2x1
jax: 0.10.0
libtpu: 0.0.40
codegen_flags: <defaults>
</compile_context>

<pallas_src>
import functools

import jax
import jax.numpy as jnp
import numpy as np
from jax.experimental import pallas as pl
from jax.experimental.pallas import tpu as pltpu


# -----------------------------------------------------------------------------
# Stage 1: cls.predictions.transform  (dense D->D + GELU + LayerNorm) -> bf16 H
# -----------------------------------------------------------------------------
def _transform_kernel(x_ref, wt_ref, bt_ref, g_ref, beta_ref, h_ref):
    x = x_ref[0]                                                       # (L, D) f32
    h = jnp.dot(x, wt_ref[...], preferred_element_type=jnp.float32)
    h = h + bt_ref[...]
    h = jax.nn.gelu(h, approximate=True)
    mu = jnp.mean(h, axis=-1, keepdims=True)
    var = jnp.mean(jnp.square(h - mu), axis=-1, keepdims=True)
    h = (h - mu) * jax.lax.rsqrt(var + 1e-12)
    h_ref[0] = (h * g_ref[...] + beta_ref[...]).astype(h_ref.dtype)


# -----------------------------------------------------------------------------
# Stage 2: vocab decoder + masked max over sequence + log(1 + relu)
#   values[b, v] = log(1 + relu(max_l( (H[b,l,:] @ Wd[:,v] + bd[v]) * mask[b,l] )))
# -----------------------------------------------------------------------------
def _decoder_kernel(h_ref, m_ref, wd_ref, bd_ref, out_ref, *, tb, seq_len):
    h = h_ref[...]                                                     # (TB*L, D) bf16
    # Batched-M matmul on the MXU, f32 accumulation.
    logits = jnp.dot(h, wd_ref[...], preferred_element_type=jnp.float32)
    logits = logits + bd_ref[...]                                      # (TB*L, TV)
    tv = logits.shape[-1]
    # Group rows back per batch element; multiplicative attention mask (matches
    # torch.max(output * attention_mask.unsqueeze(-1), dim=1) exactly).
    masked = logits.reshape(tb, seq_len, tv) * m_ref[...]              # (TB, L, TV)
    vals = jnp.max(masked, axis=1)                                     # (TB, TV)
    out_ref[...] = jnp.log(1.0 + jnp.maximum(vals, 0.0))


def sparse_encode(x_emb, attention_mask, params, *, tile_v=256, batch_block=None,
                  prune_ratio=None):
    B, L, D = x_emb.shape
    V = params["wd"].shape[1]
    assert V % tile_v == 0
    tb = B if batch_block is None else batch_block
    assert B % tb == 0

    # ---- Stage 1: transform, hoisted out of the vocab loop; H stored in bf16 ----
    h = pl.pallas_call(
        _transform_kernel,
        out_shape=jax.ShapeDtypeStruct((B, L, D), jnp.bfloat16),
        grid_spec=pltpu.PrefetchScalarGridSpec(
            num_scalar_prefetch=0,
            grid=(B,),
            in_specs=[
                pl.BlockSpec((1, L, D), lambda b: (b, 0, 0)),    # x_emb
                pl.BlockSpec((D, D), lambda b: (0, 0)),          # transform W
                pl.BlockSpec((1, D), lambda b: (0, 0)),          # transform b
                pl.BlockSpec((1, D), lambda b: (0, 0)),          # LN gamma
                pl.BlockSpec((1, D), lambda b: (0, 0)),          # LN beta
            ],
            out_specs=pl.BlockSpec((1, L, D), lambda b: (b, 0, 0)),
        ),
        compiler_params=pltpu.CompilerParams(dimension_semantics=("parallel",)),
    )(x_emb, params["wt"], params["bt"], params["gamma"], params["beta"])

    h_flat = h.reshape(B * L, D)                                   # (B*L, D) bf16
    mask3 = attention_mask.astype(jnp.float32).reshape(B, L, 1)
    wd = params["wd"].astype(jnp.bfloat16)                         # dominant HBM stream
    bd = params["bd"].astype(jnp.float32)

    # ---- Stage 2: vocab outer / batch inner so wd is streamed from HBM once ----
    out = pl.pallas_call(
        functools.partial(_decoder_kernel, tb=tb, seq_len=L),
        out_shape=jax.ShapeDtypeStruct((B, V), jnp.float32),
        grid_spec=pltpu.PrefetchScalarGridSpec(
            num_scalar_prefetch=0,
            grid=(V // tile_v, B // tb),
            in_specs=[
                pl.BlockSpec((tb * L, D), lambda v, b: (b, 0)),      # H rows
                pl.BlockSpec((tb, L, 1), lambda v, b: (b, 0, 0)),    # attn mask
                pl.BlockSpec((D, tile_v), lambda v, b: (0, v)),      # decoder W tile
                pl.BlockSpec((1, tile_v), lambda v, b: (0, v)),      # decoder bias
            ],
            out_specs=pl.BlockSpec((tb, tile_v), lambda v, b: (b, v)),
        ),
        compiler_params=pltpu.CompilerParams(
            dimension_semantics=("parallel", "parallel"),
            vmem_limit_bytes=32 * 1024 * 1024),
    )(h_flat, mask3, wd, bd)

    values = out
    if prune_ratio is not None:
        max_vals = jnp.max(values, axis=-1, keepdims=True) * prune_ratio
        values = values * (values > max_vals).astype(values.dtype)
    return values


# -----------------------------------------------------------------------------
# _encode_inf_free path:
#   out[b, v] = 1 if v in input_ids[b] else 0 ; out[:, special] = 0 ; * relu(idf)
# One grid step per batch row over the full vocab row (no vocab grid axis).
# -----------------------------------------------------------------------------
def _inf_free_kernel(ids_ref, idf_ref, sp_ref, out_ref):
    ids = ids_ref[0]                                                   # (L, 1) int32
    V = out_ref.shape[-1]
    vocab_idx = jax.lax.broadcasted_iota(jnp.int32, (1, V), 1)
    hits = (ids == vocab_idx).astype(jnp.float32)                      # (L, V)
    present = jnp.max(hits, axis=0, keepdims=True)                     # (1, V)
    out_ref[0] = present * sp_ref[...] * jnp.maximum(idf_ref[...], 0.0)


def sparse_encode_inf_free(input_ids, idf_vector, special_mask):
    B, L = input_ids.shape
    V = idf_vector.shape[0]
    ids3 = input_ids.astype(jnp.int32).reshape(B, L, 1)
    idf2 = idf_vector.astype(jnp.float32).reshape(1, V)
    sp2 = special_mask.astype(jnp.float32).reshape(1, V)

    out = pl.pallas_call(
        _inf_free_kernel,
        out_shape=jax.ShapeDtypeStruct((B, 1, V), jnp.float32),
        grid_spec=pltpu.PrefetchScalarGridSpec(
            num_scalar_prefetch=0,
            grid=(B,),
            in_specs=[
                pl.BlockSpec((1, L, 1), lambda b: (b, 0, 0)),
                pl.BlockSpec((1, V), lambda b: (0, 0)),       # idf: VMEM resident
                pl.BlockSpec((1, V), lambda b: (0, 0)),       # special mask: resident
            ],
            out_specs=pl.BlockSpec((1, 1, V), lambda b: (b, 0, 0)),
        ),
        compiler_params=pltpu.CompilerParams(dimension_semantics=("parallel",)),
    )(ids3, idf2, sp2)
    return out.reshape(B, V)


# -----------------------------------------------------------------------------
# Pure-JAX references (for correctness check)
# -----------------------------------------------------------------------------
def ref_encode(x_emb, attention_mask, params, prune_ratio=None):
    h = jnp.einsum("bld,de->ble", x_emb, params["wt"]) + params["bt"]
    h = jax.nn.gelu(h, approximate=True)
    mu = jnp.mean(h, axis=-1, keepdims=True)
    var = jnp.mean(jnp.square(h - mu), axis=-1, keepdims=True)
    h = (h - mu) * jax.lax.rsqrt(var + 1e-12)
    h = h * params["gamma"] + params["beta"]
    logits = jnp.einsum("bld,dv->blv", h, params["wd"].astype(jnp.float32))
    logits = logits + params["bd"]
    masked = logits * attention_mask[..., None].astype(jnp.float32)
    values = jnp.max(masked, axis=1)
    values = jnp.log(1.0 + jnp.maximum(values, 0.0))
    if prune_ratio is not None:
        mx = jnp.max(values, axis=-1, keepdims=True) * prune_ratio
        values = values * (values > mx).astype(values.dtype)
    return values


def ref_inf_free(input_ids, idf_vector, special_mask):
    V = idf_vector.shape[0]
    onehot = (input_ids[..., None] == jnp.arange(V)[None, None, :]).any(axis=1)
    out = onehot.astype(jnp.float32) * special_mask[None, :]
    return out * jnp.maximum(idf_vector, 0.0)[None, :]


# -----------------------------------------------------------------------------
if __name__ == "__main__":
    B, L, D, V = 2, 8, 128, 512
    TILE_V = 256

    key = jax.random.PRNGKey(0)
    k_emb, k_wt, k_bt, k_g, k_b, k_bd, k_ids, k_idf = jax.random.split(key, 8)

    # deterministic synthetic parameters (module __init__ would load a checkpoint)
    emb_table = jax.random.normal(k_emb, (V, D), jnp.float32) * 0.05
    params = {
        "wt": jax.random.normal(k_wt, (D, D), jnp.float32) * 0.05,
        "bt": jax.random.normal(k_bt, (1, D), jnp.float32) * 0.02,
        "gamma": 1.0 + 0.1 * jax.random.normal(k_g, (1, D), jnp.float32),
        "beta": 0.02 * jax.random.normal(k_b, (1, D), jnp.float32),
        # decoder tied to word embeddings; stored bf16 (dominant HBM stream)
        "wd": emb_table.T.astype(jnp.bfloat16),
        "bd": jax.random.normal(k_bd, (1, V), jnp.float32) * 0.02,
    }
    idf_vector = jax.random.uniform(k_idf, (V,), jnp.float32, 0.2, 2.0)
    special_token_ids = jnp.array([0, 1, 2, 3], dtype=jnp.int32)
    special_mask = jnp.ones((V,), jnp.float32).at[special_token_ids].set(0.0)

    # inputs
    input_ids = jax.random.randint(k_ids, (B, L), 0, V, jnp.int32)
    attention_mask = jnp.array(
        [[1, 1, 1, 1, 1, 1, 1, 1],
         [1, 1, 1, 1, 1, 0, 0, 0]], dtype=jnp.int32)

    # embedding lookup = glue (gather)
    x_emb = emb_table[input_ids]                                     # (B, L, D)

    # ---- _encode path (prune_ratio=None and prune_ratio=0.5) ----
    vals = jax.block_until_ready(
        sparse_encode(x_emb, attention_mask, params, tile_v=TILE_V))
    vals_ref = ref_encode(x_emb, attention_mask, params)
    np.testing.assert_allclose(np.asarray(vals), np.asarray(vals_ref),
                               rtol=2e-2, atol=2e-2)

    vals_p = jax.block_until_ready(
        sparse_encode(x_emb, attention_mask, params, tile_v=TILE_V,
                      prune_ratio=0.5))
    vals_p_ref = ref_encode(x_emb, attention_mask, params, prune_ratio=0.5)
    np.testing.assert_allclose(np.asarray(vals_p), np.asarray(vals_p_ref),
                               rtol=2e-2, atol=2e-2)

    # ---- inf_free path ----
    vals_if = jax.block_until_ready(
        sparse_encode_inf_free(input_ids, idf_vector, special_mask))
    vals_if_ref = ref_inf_free(input_ids, idf_vector, special_mask)
    np.testing.assert_allclose(np.asarray(vals_if), np.asarray(vals_if_ref),
                               rtol=1e-5, atol=1e-5)

    print("KERNEL_OK")
</pallas_src>

<mosaic_0001>
module attributes {stable_mosaic.version = 11 : i64} {
  func.func @_transform_kernel(%arg0: i32, %arg1: memref<1x8x128xf32, #tpu.memory_space<vmem>>, %arg2: memref<128x128xf32, #tpu.memory_space<vmem>>, %arg3: memref<1x128xf32, #tpu.memory_space<vmem>>, %arg4: memref<1x128xf32, #tpu.memory_space<vmem>>, %arg5: memref<1x128xf32, #tpu.memory_space<vmem>>, %arg6: memref<1x8x128xbf16, #tpu.memory_space<vmem>>) attributes {dimension_semantics = [#tpu.dimension_semantics<parallel>], iteration_bounds = array<i64: 2>, scalar_prefetch = 0 : i64, scratch_operands = 0 : i64, tpu.core_type = #tpu.core_type<tc>, window_params = [{transform_indices = @transform_0, window_bounds = array<i64: 1, 8, 128>}, {pipeline_mode = #tpu.pipeline_mode<synchronous>, transform_indices = @transform_1, window_bounds = array<i64: 128, 128>}, {pipeline_mode = #tpu.pipeline_mode<synchronous>, transform_indices = @transform_2, window_bounds = array<i64: 1, 128>}, {pipeline_mode = #tpu.pipeline_mode<synchronous>, transform_indices = @transform_3, window_bounds = array<i64: 1, 128>}, {pipeline_mode = #tpu.pipeline_mode<synchronous>, transform_indices = @transform_4, window_bounds = array<i64: 1, 128>}, {transform_indices = @transform_5, window_bounds = array<i64: 1, 8, 128>}]} {
    %c0 = arith.constant 0 : index
    %c0_0 = arith.constant 0 : index
    %c0_1 = arith.constant 0 : index
    %0 = vector.load %arg1[%c0, %c0_0, %c0_1] : memref<1x8x128xf32, #tpu.memory_space<vmem>>, vector<1x8x128xf32>
    %1 = vector.shape_cast %0 : vector<1x8x128xf32> to vector<8x128xf32>
    %c0_2 = arith.constant 0 : index
    %c0_3 = arith.constant 0 : index
    %2 = vector.load %arg2[%c0_2, %c0_3] : memref<128x128xf32, #tpu.memory_space<vmem>>, vector<128x128xf32>
    %cst = arith.constant dense<0.000000e+00> : vector<8x128xf32>
    %3 = tpu.matmul %1, %2, %cst {dimension_numbers = #tpu.dot_dimension_numbers<[1], [0], [0], [1], [0, 0, 1, 1], [], []>} : vector<8x128xf32>, vector<128x128xf32>, vector<8x128xf32> -> vector<8x128xf32>
    %c0_4 = arith.constant 0 : index
    %c0_5 = arith.constant 0 : index
    %4 = vector.load %arg3[%c0_4, %c0_5] : memref<1x128xf32, #tpu.memory_space<vmem>>, vector<1x128xf32>
    %5 = vector.broadcast %4 : vector<1x128xf32> to vector<8x128xf32>
    %6 = arith.addf %3, %5 : vector<8x128xf32>
    %7 = arith.mulf %6, %6 : vector<8x128xf32>
    %8 = arith.mulf %6, %7 : vector<8x128xf32>
    %cst_6 = arith.constant 4.471500e-02 : f32
    %9 = vector.broadcast %cst_6 : f32 to vector<8x128xf32>
    %10 = arith.mulf %9, %8 : vector<8x128xf32>
    %11 = arith.addf %6, %10 : vector<8x128xf32>
    %cst_7 = arith.constant 0.797884583 : f32
    %12 = vector.broadcast %cst_7 : f32 to vector<8x128xf32>
    %13 = arith.mulf %12, %11 : vector<8x128xf32>
    %14 = math.tanh %13 : vector<8x128xf32>
    %cst_8 = arith.constant 1.000000e+00 : f32
    %15 = vector.broadcast %cst_8 : f32 to vector<8x128xf32>
    %16 = arith.addf %15, %14 : vector<8x128xf32>
    %cst_9 = arith.constant 5.000000e-01 : f32
    %17 = vector.broadcast %cst_9 : f32 to vector<8x128xf32>
    %18 = arith.mulf %17, %16 : vector<8x128xf32>
    %19 = arith.mulf %6, %18 : vector<8x128xf32>
    %cst_10 = arith.constant dense<0.000000e+00> : vector<8xf32>
    %20 = vector.multi_reduction <add>, %19, %cst_10 [1] : vector<8x128xf32> to vector<8xf32>
    %21 = vector.shape_cast %20 : vector<8xf32> to vector<8x1xf32>
    %cst_11 = arith.constant 1.280000e+02 : f32
    %22 = vector.broadcast %cst_11 : f32 to vector<8x1xf32>
    %23 = arith.divf %21, %22 : vector<8x1xf32>
    %24 = vector.broadcast %23 : vector<8x1xf32> to vector<8x128xf32>
    %25 = arith.subf %19, %24 : vector<8x128xf32>
    %26 = arith.mulf %25, %25 : vector<8x128xf32>
    %cst_12 = arith.constant dense<0.000000e+00> : vector<8xf32>
    %27 = vector.multi_reduction <add>, %26, %cst_12 [1] : vector<8x128xf32> to vector<8xf32>
    %28 = vector.shape_cast %27 : vector<8xf32> to vector<8x1xf32>
    %cst_13 = arith.constant 1.280000e+02 : f32
    %29 = vector.broadcast %cst_13 : f32 to vector<8x1xf32>
    %30 = arith.divf %28, %29 : vector<8x1xf32>
    %31 = vector.broadcast %23 : vector<8x1xf32> to vector<8x128xf32>
    %32 = arith.subf %19, %31 : vector<8x128xf32>
    %cst_14 = arith.constant 9.99999996E-13 : f32
    %33 = vector.broadcast %cst_14 : f32 to vector<8x1xf32>
    %34 = arith.addf %30, %33 : vector<8x1xf32>
    %35 = math.rsqrt %34 : vector<8x1xf32>
    %36 = vector.broadcast %35 : vector<8x1xf32> to vector<8x128xf32>
    %37 = arith.mulf %32, %36 : vector<8x128xf32>
    %c0_15 = arith.constant 0 : index
    %c0_16 = arith.constant 0 : index
    %38 = vector.load %arg4[%c0_15, %c0_16] : memref<1x128xf32, #tpu.memory_space<vmem>>, vector<1x128xf32>
    %39 = vector.broadcast %38 : vector<1x128xf32> to vector<8x128xf32>
    %40 = arith.mulf %37, %39 : vector<8x128xf32>
    %c0_17 = arith.constant 0 : index
    %c0_18 = arith.constant 0 : index
    %41 = vector.load %arg5[%c0_17, %c0_18] : memref<1x128xf32, #tpu.memory_space<vmem>>, vector<1x128xf32>
    %42 = vector.broadcast %41 : vector<1x128xf32> to vector<8x128xf32>
    %43 = arith.addf %40, %42 : vector<8x128xf32>
    %44 = arith.truncf %43 : vector<8x128xf32> to vector<8x128xbf16>
    %c0_19 = arith.constant 0 : index
    %c0_20 = arith.constant 0 : index
    %c0_21 = arith.constant 0 : index
    %45 = vector.load %arg6[%c0_19, %c0_20, %c0_21] : memref<1x8x128xbf16, #tpu.memory_space<vmem>>, vector<1x8x128xbf16>
    %46 = vector.shape_cast %45 : vector<1x8x128xbf16> to vector<8x128xbf16>
    %47 = vector.shape_cast %44 : vector<8x128xbf16> to vector<1x8x128xbf16>
    tpu.vector_store %arg6[%c0_19, %c0_20, %c0_21], %47 {strides = array<i32>} : memref<1x8x128xbf16, #tpu.memory_space<vmem>>, vector<1x8x128xbf16>,
    return
  }
  func.func @transform_0(%arg0: i32) -> (i32, i32, i32) {
    %c0_i32 = arith.constant 0 : i32
    %c0_i32_0 = arith.constant 0 : i32
    %c0_i32_1 = arith.constant 0 : i32
    return %arg0, %c0_i32, %c0_i32_0 : i32, i32, i32
  }
  func.func @transform_1(%arg0: i32) -> (i32, i32) {
    %c0_i32 = arith.constant 0 : i32
    %c0_i32_0 = arith.constant 0 : i32
    %c0_i32_1 = arith.constant 0 : i32
    return %c0_i32, %c0_i32_0 : i32, i32
  }
  func.func @transform_2(%arg0: i32) -> (i32, i32) {
    %c0_i32 = arith.constant 0 : i32
    %c0_i32_0 = arith.constant 0 : i32
    %c0_i32_1 = arith.constant 0 : i32
    return %c0_i32, %c0_i32_0 : i32, i32
  }
  func.func @transform_3(%arg0: i32) -> (i32, i32) {
    %c0_i32 = arith.constant 0 : i32
    %c0_i32_0 = arith.constant 0 : i32
    %c0_i32_1 = arith.constant 0 : i32
    return %c0_i32, %c0_i32_0 : i32, i32
  }
  func.func @transform_4(%arg0: i32) -> (i32, i32) {
    %c0_i32 = arith.constant 0 : i32
    %c0_i32_0 = arith.constant 0 : i32
    %c0_i32_1 = arith.constant 0 : i32
    return %c0_i32, %c0_i32_0 : i32, i32
  }
  func.func @transform_5(%arg0: i32) -> (i32, i32, i32) {
    %c0_i32 = arith.constant 0 : i32
    %c0_i32_0 = arith.constant 0 : i32
    %c0_i32_1 = arith.constant 0 : i32
    return %arg0, %c0_i32, %c0_i32_0 : i32, i32, i32
  }
}

</mosaic_0001>

<bundles_post_ra>
// kernel: tpu_custom_call.1
= control target key start
LH: loop header
LB: loop body
LE: loop exit
PB: predicated region body
PF: predicated region fallthrough
CT: control target
= control target key end

     0   :  { %10 = vsyncpa [#allocation3], 0  ;;  %s944_s0 = inlined_call_operand.hbm [shape: f32[2,8,128], index: 0, kind: input, shape index: {}]   ;;  %s945_s1 = inlined_call_operand.hbm [shape: f32[128,128], index: 1, kind: input, shape index: {}]   ;;  %s946_s2 = inlined_call_operand.vmem [shape: f32[1,128], index: 2, kind: input, shape index: {}]   ;;  %s947_s3 = inlined_call_operand.vmem [shape: f32[1,128], index: 3, kind: input, shape index: {}]   ;;  %s948_s4 = inlined_call_operand.vmem [shape: f32[1,128], index: 4, kind: input, shape index: {}]   ;;  %s949_s5 = inlined_call_operand.hbm [shape: bf16[2,8,128], index: 5, kind: output, shape index: {}]  }
   0x1   :  { %12 = vsyncpa [#allocation3 + $0x1], 0 }
   0x2   :  { %13 = vsyncpa [#allocation6], 0 }
   0x3   :  { %14 = vsyncpa [#allocation4], 0 }
   0x4   :  { %16 = vsyncpa [#allocation4 + $0x1], 0  ;;  %s777_s18 = smov 0   ;;  %s779_s19 = smov 0  }
   0x5   :  { %s781_s20 = smov 0   ;;  %s783_s21 = smov 0  }
   0x6 LB: > { %s798_s22 = sadd.s32 4294967295, %s738_s21   ;;  %s482_s23 = sadd.s32 4294967294, %s738_s21   ;;  %s738_s21 = sphi %s783_s21, %s971_s21   ;;  %s734_s20 = sphi %s781_s20, %s970_s20   ;;  %s730_s19 = sphi %s779_s19, %s969_s19   ;;  %s726_s18 = sphi %s777_s18, %s968_s18  }
   0x7   : > { %p42_p0 = scmp.ne.s32.totalorder %s730_s19, %s726_s18  ;;  %p950_p1 = scmp.eq.s32.totalorder %s798_s22, 0 }
   0x8   : > { %p156_p3 = scmp.eq.s32.totalorder %s482_s23, 1  ;;  %p483_p5 = scmp.ge.s32.totalorder %s738_s21, 1 }
   0x9   : > { %p807_p4 = por %p950_p1, %p42_p0  ;;  %p163_p7 = scmp.lt.s32.totalorder %s738_s21, 3 }
   0xa   : > { %p812_p6 = por %p156_p3, %p42_p0  ;;  %s740_s27 = smov [#allocation5]  }
   0xb   : > { %s954_s24 = scalar_select %p807_p4, 1, 0 }
   0xc   : > { %s955_s25 = scalar_select %p812_p6, 1, 0 }
   0xd   : > { %p817_p8 = pnand %p483_p5, %p163_p7  ;;  %s175_s28 = sshll.u32 %s740_s27, 4  ;;  %s176_s28 = int_to_ptr.vmem [resolvable:$true] %s175_s28 }
   0xe   : > { %s831_s30 = sadd.s32 1, %s738_s21   ;;  %s29_s6 = sadd.s32 1, %s734_s20 }
   0xf   : > { %s956_s26 = scalar_select %p817_p8, 1, 0 }
  0x10   : > { %p559_p9 = pneg %p817_p8  ;;  %s26_s7 = ssub.s32 %s738_s21, %s831_s30 }
  0x11   : > { %s627_s8 = scalar_lea.vmem %s176_s28, 2048  ;;  %p635_p5 = scmp.lt.s32.totalorder %s176_s28, %s176_s28 }
  0x12   : > { %p826_p11 = pnand %p559_p9, %p950_p1  ;;  %p628_p13 = scmp.ne.s32.totalorder %s176_s28, %s627_s8 }
  0x13   : > { %p636_p7 = scmp.lt.s32.totalorder %s627_s8, %s627_s8 }
  0x14   : > { %p618_p12 = pneg %p826_p11 }
  0x15   : > { %p637_p10 = por %p636_p7, %p635_p5 }
  0x16   : > { %p630_p0 = pnand %p628_p13, %p618_p12 }
  0x18   : > { %p631_p3 = pneg %p630_p0 }
  0x1a   : > { %p638_p2 = pnand %p637_p10, %p631_p3 }
  0x1c   : > { %641 = shalt.err (!%p638_p2)
}
  0x1d   : > { %s741_s9 = smov 128   ;;  %s742_s10 = smov 8  }
  0x1e   : > { %562 = dma.hbm_to_vmem [thread:$0]  (!%p826_p11), %s945_s1, 2048, %s176_s28, [#allocation6], %s741_s9, %s741_s9, %s742_s10  }
  0x1f   : > { %p27_p9 = scmp.eq.s32.totalorder %s26_s7, 0  ;;  %p36_p12 = scmp.ne.s32.totalorder %s734_s20, %s730_s19 }
  0x20   : > { %p37_p10 = scmp.eq.s32.totalorder %s738_s21, 0  ;;  %p572_p2 = scmp.lt.s32.totalorder %s738_s21, 2 }
  0x21   : > { %s848_s13 = scalar_select %p27_p9, %s734_s20, %s29_s6  }
  0x22   : > { %p38_p13 = por %p37_p10, %p36_p12  ;;  %p958_p0 = scmp.eq.s32.totalorder %s798_s22, 1 }
  0x23   : > { %s198_s15 = sand.u32 1, %s734_s20   ;;  %s487_s16 = sshll.u32 %s738_s21, 7 }
  0x24   : > { %p852_p3 = por %p958_p0, %p36_p12  ;;  %s486_s17 = sshll.u32 %s198_s15, 3 }
  0x25   : > { %s861_s29 = scalar_lea.hbm %s944_s0, %s487_s16  ;;  %s202_s28 = scalar_lea.vmem [#allocation2], %s486_s17 }
  0x26   : > { %s959_s14 = scalar_select %p852_p3, 1, 0 }
  0x27   : > { %s209_s6 = sshll.u32 %s202_s28, 4  ;;  %p863_p11 = pnand %p572_p2, %p38_p13  ;;  %s210_s6 = int_to_ptr.vmem [resolvable:$true] %s209_s6 }
  0x28   : > { %s199_s8 = scalar_lea.sflag [#allocation3], %s198_s15  ;;  %s642_s9 = scalar_lea.hbm %s861_s29, 128 }
  0x29   : > { %p643_p5 = scmp.ne.s32.totalorder %s861_s29, %s642_s9  ;;  %p644_p7 = pneg %p863_p11 }
  0x2a   : > { %s647_s12 = scalar_lea.hbm %s944_s0, 256  ;;  %p648_p10 = scmp.lt.s32.totalorder %s861_s29, %s944_s0 }
  0x2b   : > { %p645_p9 = pnand %p644_p7, %p643_p5  ;;  %p649_p2 = scmp.lt.s32.totalorder %s647_s12, %s642_s9 }
  0x2d   : > { %p646_p12 = pneg %p645_p9  ;;  %p650_p13 = por %p649_p2, %p648_p10 }
  0x2f   : > { %p651_p0 = pnand %p650_p13, %p646_p12 }
  0x31   : > { %654 = shalt.err (!%p651_p0)
}
  0x32   : > { %s655_s23 = scalar_lea.vmem %s210_s6, 128  ;;  %s743_s15 = smov [#allocation2]  }
  0x33   : > { %p656_p1 = scmp.ne.s32.totalorder %s210_s6, %s655_s23  ;;  %s660_s27 = sshll.u32 %s743_s15, 4  ;;  %s661_s27 = int_to_ptr.vmem [resolvable:$false] %s660_s27 }
  0x34   : > { %s662_s28 = scalar_lea.vmem %s661_s27, 256  ;;  %p663_p5 = scmp.lt.s32.totalorder %s210_s6, %s661_s27 }
  0x35   : > { %p658_p6 = pnand %p656_p1, %p644_p7  ;;  %p664_p9 = scmp.lt.s32.totalorder %s662_s28, %s655_s23 }
  0x37   : > { %p659_p3 = pneg %p658_p6  ;;  %p665_p4 = por %p664_p9, %p663_p5 }
  0x39   : > { %p666_p8 = pnand %p665_p4, %p659_p3 }
  0x3b   : > { %669 = shalt.err (!%p666_p8)
}
  0x3c   : > { %566 = dma.hbm_to_vmem [thread:$0]  (!%p863_p11), %s861_s29, 128, %s210_s6, %s199_s8  }
  0x3d   : > { %p961_p12 = scmp.ne.s32.totalorder %s956_s26, 0 }
  0x3e   : > { %s884_s9 = sand.u32 (!%p961_p12), 1, %s730_s19   ;;  %p962_p1 = scmp.ne.s32.totalorder (!%p961_p12), %s954_s24, 0 }
  0x3f   : > { %218 = sbr.rel (%p961_p12) target bundleno = 651 (0x28b), region = 40  ;;  %s489_s10 = sshll.u32 (!%p961_p12), %s884_s9, 3 }
  0x40   : > { %s221_s11 = scalar_lea.sflag (!%p961_p12), [#allocation3], %s884_s9  ;;  %s888_s12 = scalar_lea.vmem (!%p961_p12), [#allocation2], %s489_s10 }
  0x44   : > { %713 = dma.done.wait (%p962_p1), %s221_s11, 128  }
  0x45   : > { %715 = vsyncadd (%p962_p1), %s221_s11, 4294967168  ;;  %p963_p4 = scmp.eq.s32.totalorder %s798_s22, 0 }
  0x47   : > { %717 = dma.done.wait (%p963_p4), [#allocation6], 2048   ;;  %p964_p6 = pmov %p963_p4 }
  0x48   : > { %v744_v0 = vmov 0.0   ;;  %vm745_vm0 = vmmov 0   ;;  %v271_v1 = vld [vmem:[#allocation5 + $0x78] sm:$0xff]  ;;  %v270_v2 = vld [vmem:[#allocation5 + $0x70] sm:$0xff]  ;;  %v269_v3 = vld [vmem:[#allocation5 + $0x68] sm:$0xff]  ;;  %s491_s29 = sshll.u32 %s884_s9, 2 }
  0x49   : > { %719 = vsyncadd (%p964_p6), [#allocation6], 4294965248  ;;  %516 = vmatprep.subr.mxu0 %v744_v0  ;;  %548 = vmatprep.mubr.msk.f32.mxu0 %vm745_vm0, %v744_v0  ;;  %v268_v4 = vld [vmem:[#allocation5 + $0x60] sm:$0xff]  ;;  %v267_v5 = vld [vmem:[#allocation5 + $0x58] sm:$0xff]  ;;  %s496_s17 = sshll.u32 %s798_s22, 6  ;;  %s254_s23 = scalar_lea.vmem [#allocation7], %s491_s29 }
  0x4a   : > { %517 = vmatpush3.msra.mxu0 %v271_v1  ;;  %v266_v6 = vld [vmem:[#allocation5 + $0x50] sm:$0xff]  ;;  %v265_v7 = vld [vmem:[#allocation5 + $0x48] sm:$0xff]  ;;  %v264_v8 = vld [vmem:[#allocation5 + $0x40] sm:$0xff]  ;;  %s402_s15 = sshll.u32 %s254_s23, 4  ;;  %s400_s10 = scalar_lea.hbm %s949_s5, %s496_s17  ;;  %s403_s15 = int_to_ptr.vmem [resolvable:$true] %s402_s15 }
  0x4b   : > { %518 = vmatprep.subr.mxu0 %v744_v0  ;;  %v263_v9 = vld [vmem:[#allocation5 + $0x38] sm:$0xff]  ;;  %v262_v10 = vld [vmem:[#allocation5 + $0x30] sm:$0xff]  ;;  %v261_v11 = vld [vmem:[#allocation5 + $0x28] sm:$0xff]  ;;  %s389_s11 = scalar_lea.sflag [#allocation4], %s884_s9  ;;  %p965_p3 = scmp.ne.s32.totalorder %s959_s14, 0 }
  0x4c   : > { %519 = vmatpush3.msra.mxu0 %v270_v2  ;;  %v260_v12 = vld [vmem:[#allocation5 + $0x20] sm:$0xff]  ;;  %v259_v13 = vld [vmem:[#allocation5 + $0x18] sm:$0xff]  ;;  %v258_v14 = vld [vmem:[#allocation5 + $0x10] sm:$0xff]  ;;  %s746_s24 = smov [#allocation7]  }
  0x4d   : > { %520 = vmatprep.subr.mxu0 %v744_v0  ;;  %v257_v15 = vld [vmem:[#allocation5 + $0x8] sm:$0xff]  ;;  %v256_v16 = vld [vmem:[#allocation5] sm:$0xff]  ;;  %v255_v17 = vld [vmem:[%s888_s12] sm:$0xff]  ;;  %s670_s12 = scalar_lea.vmem %s403_s15, 64  ;;  %s674_s26 = sshll.u32 %s746_s24, 4  ;;  %s675_s26 = int_to_ptr.vmem [resolvable:$false] %s674_s26 }
  0x4e   : > { %521 = vmatpush3.msra.mxu0 %v269_v3  ;;  %v492_v18 = vld [vmem:[%s946_s2] ss:$0 sm:$0xff]  ;;  %p671_p8 = scmp.ne.s32.totalorder %s403_s15, %s670_s12  ;;  %s676_s22 = scalar_lea.vmem %s675_s26, 128 }
  0x4f   : > { %522 = vmatprep.subr.mxu0 %v744_v0  ;;  %v493_v39 = vld [vmem:[%s947_s3] ss:$0 sm:$0xff]  ;;  %p677_p10 = scmp.lt.s32.totalorder %s403_s15, %s675_s26  ;;  %p678_p2 = scmp.lt.s32.totalorder %s676_s22, %s670_s12 }
  0x50   : > { %523 = vmatpush3.msra.mxu0 %v268_v4  ;;  %v494_v41 = vld [vmem:[%s948_s4] ss:$0 sm:$0xff]  ;;  %p672_p11 = pnand %p671_p8, %p965_p3 }
  0x51   : > { %524 = vmatprep.subr.mxu0 %v744_v0  ;;  %p679_p13 = por %p678_p2, %p677_p10 }
  0x52   : > { %525 = vmatpush3.msra.mxu0 %v267_v5  ;;  %p673_p7 = pneg %p672_p11 }
  0x53   : > { %526 = vmatprep.subr.mxu0 %v744_v0 }
  0x54   : > { %527 = vmatpush3.msra.mxu0 %v266_v6  ;;  %p680_p0 = pnand %p679_p13, %p673_p7 }
  0x55   : > { %528 = vmatprep.subr.mxu0 %v744_v0 }
  0x56   : > { %529 = vmatpush3.msra.mxu0 %v265_v7 }
  0x57   : > { %530 = vmatprep.subr.mxu0 %v744_v0 }
  0x58   : > { %531 = vmatpush3.msra.mxu0 %v264_v8 }
  0x59   : > { %532 = vmatprep.subr.mxu0 %v744_v0 }
  0x5a   : > { %533 = vmatpush3.msra.mxu0 %v263_v9 }
  0x5b   : > { %534 = vmatprep.subr.mxu0 %v744_v0 }
  0x5c   : > { %535 = vmatpush3.msra.mxu0 %v262_v10 }
  0x5d   : > { %536 = vmatprep.subr.mxu0 %v744_v0 }
  0x5e   : > { %537 = vmatpush3.msra.mxu0 %v261_v11 }
  0x5f   : > { %538 = vmatprep.subr.mxu0 %v744_v0 }
  0x60   : > { %539 = vmatpush3.msra.mxu0 %v260_v12 }
  0x61   : > { %540 = vmatprep.subr.mxu0 %v744_v0 }
  0x62   : > { %541 = vmatpush3.msra.mxu0 %v259_v13 }
  0x63   : > { %542 = vmatprep.subr.mxu0 %v744_v0 }
  0x64   : > { %543 = vmatpush3.msra.mxu0 %v258_v14 }
  0x65   : > { %544 = vmatprep.subr.mxu0 %v744_v0 }
  0x66   : > { %545 = vmatpush3.msra.mxu0 %v257_v15 }
  0x67   : > { %546 = vmatprep.subr.mxu0 %v744_v0 }
  0x68   : > { %547 = vmatpush3.msra.mxu0 %v256_v16 }
  0x69   : > { %549 = vmatmul.mubr.f32.vlgmr.msra.gmra.mxu0 %v255_v17 }
 0x129   : > { %v345_v19 = vpop.f32.mrf.mxu0 }
 0x12a   : > { %v346_v20 = vadd.f32 %v492_v18, %v345_v19 }
 0x12b   : > { %v550_v21 = vpop.f32.mrf.mxu0 }
 0x12c   : > { %v349_v22 = vmul.f32 %v346_v20, %v346_v20 }
 0x12e   : > { %v350_v23 = vmul.f32 %v349_v22, %v346_v20 }
 0x130   : > { %v351_v24 = vmul.f32 0.044715, %v350_v23 }
 0x132   : > { %v352_v25 = vadd.f32 %v351_v24, %v346_v20 }
 0x134   : > { %v353_v26 = vmul.f32 0.7978846, %v352_v25 }
 0x136   : > { %612 = vtanh.f32 %v353_v26 }
 0x143   : > { %v613_v27 = vpop.eup %612 }
 0x144   : > { %v355_v28 = vadd.f32 1.0, %v613_v27 }
 0x146   : > { %v356_v29 = vmul.f32 0.5, %v355_v28 }
 0x148   : > { %v357_v30 = vmul.f32 %v356_v29, %v346_v20 }
 0x14a   : > { %358 = vadd.xlane.f32.xlu0 %v357_v30 }
 0x1d3   : > { %v359_v31 = vpop.xlane.xlu0 %358 }
 0x1d4   : > { %v361_v32 = vmul.f32 0.0078125, %v359_v31 }
 0x1d6   : > { %v362_v33 = vsub.f32 %v357_v30, %v361_v32 }
 0x1d8   : > { %v363_v34 = vmul.f32 %v362_v33, %v362_v33 }
 0x1da   : > { %364 = vadd.xlane.f32.xlu0 %v363_v34 }
 0x263   : > { %v365_v35 = vpop.xlane.xlu0 %364 }
 0x264   : > { %v366_v36 = vmul.f32 0.0078125, %v365_v35 }
 0x266   : > { %v367_v37 = vadd.f32 1e-12, %v366_v36 }
 0x268   : > { %614 = vrsqrt.f32 %v367_v37 }
 0x275   : > { %v615_v38 = vpop.eup %614 }
 0x276   : > { %v369_v40 = vmul.f32 %v615_v38, %v362_v33 }
 0x278   : > { %v377_v42 = vmul.f32 %v493_v39, %v369_v40 }
 0x27a   : > { %v385_v43 = vadd.f32 %v494_v41, %v377_v42 }
 0x27c   : > { %v386_v44 = vpack.c.bf16 %v385_v43, %v385_v43 }
 0x27e   : > { %387 = vst [vmem:[%s254_s23] sm:$0xf] %v386_v44 }
 0x27f   : > { %683 = shalt.err (!%p680_p0)
}
 0x280   : > { %s684_s29 = scalar_lea.hbm %s400_s10, 64  ;;  %s688_s7 = scalar_lea.hbm %s949_s5, 128 }
 0x281   : > { %p685_p5 = scmp.ne.s32.totalorder %s400_s10, %s684_s29  ;;  %p689_p1 = scmp.lt.s32.totalorder %s400_s10, %s949_s5 }
 0x282   : > { %p690_p4 = scmp.lt.s32.totalorder %s688_s7, %s684_s29 }
 0x283   : > { %p686_p9 = pnand %p685_p5, %p965_p3 }
 0x284   : > { %p691_p6 = por %p690_p4, %p689_p1 }
 0x285   : > { %p687_p12 = pneg %p686_p9 }
 0x287   : > { %p692_p8 = pnand %p691_p6, %p687_p12 }
 0x289   : > { %695 = shalt.err (!%p692_p8)
}
 0x28a   : > { %557 = dma.vmem_to_hbm [thread:$0]  (%p965_p3), %s403_s15, 64, %s400_s10, %s389_s11  }
 0x28b PF: > { %s414_s17 = sand.u32 1, %s726_s18   ;;  %p966_p11 = scmp.ne.s32.totalorder %s955_s25, 0 }
 0x28c   : > { %p967_p7 = scmp.ge.s32.totalorder %s738_s21, 2  ;;  %s415_s23 = scalar_lea.sflag [#allocation4], %s414_s17 }
 0x28e   : > { %p568_p10 = pnand %p967_p7, %p966_p11 }
 0x290   : > { %p569_p2 = pneg %p568_p10 }
 0x292   : > { %721 = dma.done.wait (%p569_p2), %s415_s23, 64  }
 0x293   : > { %723 = vsyncadd (%p569_p2), %s415_s23, 4294967232  ;;  %p19_p13 = scmp.ge.s32.totalorder %s831_s30, 4   ;;  %s968_s18 = smov %s730_s19 }
 0x294   : > { %s969_s19 = smov %s734_s20  ;;  %s970_s20 = smov %s848_s13 }
 0x295   : > { %s971_s21 = smov %s831_s30  ;;  %21 = sbr.rel (!%p19_p13) target bundleno = 6 (0x6), region = 89 }
 0x29a   :  { %420 = vsyncpa [#allocation3], 1 }
 0x29b   :  { %422 = vsyncpa [#allocation3 + $0x1], 1 }
 0x29c   :  { %423 = vsyncpa [#allocation6], 1 }
 0x29d   :  { %424 = vsyncpa [#allocation4], 1 }
 0x29e   :  { %426 = vsyncpa [#allocation4 + $0x1], 1 }

</bundles_post_ra>
